<compile_context>
chip_gen: v6e
topology: v6e:2x2x1
jax: 0.10.0
libtpu: 0.0.40
codegen_flags: <defaults>
</compile_context>

<pallas_src>
import jax
import jax.numpy as jnp
from jax.experimental import pallas as pl
from jax.experimental.pallas import tpu as pltpu


# ----------------------------------------------------------------------------- kernel

def _head_kernel(x_ref, w1_ref, b1_ref, w2_ref, b2_ref, o_ref):
    """Fused classifier head for the whole batch.

    x_ref : (B, S, T)  backbone features (electrode dim already squeezed)
    w1_ref: (S, H)     fc1 weight, already transposed to (in, out)
    b1_ref: (1, H)     fc1 bias
    w2_ref: (H, C)     fc2 weight, transposed to (in, out)
    b2_ref: (1, C)     fc2 bias
    o_ref : (B, C)     logits
    """
    x = x_ref[...].astype(jnp.float32)                     # (B, S, T)
    pooled = jnp.mean(x, axis=-1)                          # mean over time -> (B, S)

    h = jnp.dot(pooled, w1_ref[...],
                preferred_element_type=jnp.float32) + b1_ref[...]
    h = jnp.maximum(h, 0.0)                                # ReLU
    # Dropout: identity at inference time.
    out = jnp.dot(h, w2_ref[...],
                  preferred_element_type=jnp.float32) + b2_ref[...]
    o_ref[...] = out.astype(o_ref.dtype)


# ----------------------------------------------------------------------------- wrapper

def classifier_head_forward(params, x):
    """x: (B, num_S, 1, T) or (B, num_S, T) -> logits (B, num_classes)."""
    w1, b1, w2, b2 = params["w1"], params["b1"], params["w2"], params["b2"]
    S, H = w1.shape
    _, C = w2.shape

    if x.ndim == 4:
        # torch.mean(dim=-1) then squeeze(dim=-1): the electrode dim is 1 here.
        assert x.shape[1] == S and x.shape[2] == 1, x.shape
        x3 = x.reshape(x.shape[0], S, x.shape[3])
    else:
        assert x.ndim == 3 and x.shape[1] == S, x.shape
        x3 = x
    B = x3.shape[0]

    vmem = pltpu.MemorySpace.VMEM
    return pl.pallas_call(
        _head_kernel,
        out_shape=jax.ShapeDtypeStruct((B, C), jnp.float32),
        # No grid: every operand is tiny, so the whole problem lives in VMEM and the
        # kernel runs as a single invocation (batch folded into the matmul rows).
        in_specs=[pl.BlockSpec(memory_space=vmem) for _ in range(5)],
        out_specs=pl.BlockSpec(memory_space=vmem),
    )(x3.astype(jnp.float32), w1, b1, w2, b2)


def init_params(key, num_S, hid_channels, num_classes):
    k1, k2, k3, k4 = jax.random.split(key, 4)

    def rnd(k, shape, scale=0.1):
        return (scale * jax.random.normal(k, shape)).astype(jnp.float32)

    # Weights are stored as (in, out) == torch_weight.T so the in-kernel dots are
    # plain row-major matmuls.
    return {
        "w1": rnd(k1, (num_S, hid_channels)),
        "b1": rnd(k2, (1, hid_channels)),
        "w2": rnd(k3, (hid_channels, num_classes)),
        "b2": rnd(k4, (1, num_classes)),
    }


# ----------------------------------------------------------------------------- main

if __name__ == "__main__":
    # Small deterministic config consistent with the TSception backbone output
    # (B, num_S, 1, T_pooled).
    B, num_S, T = 2, 16, 5
    hid_channels, num_classes = 32, 4

    key = jax.random.PRNGKey(0)
    kx, kp = jax.random.split(key)
    x = jax.random.normal(kx, (B, num_S, 1, T), dtype=jnp.float32)
    params = init_params(kp, num_S, hid_channels, num_classes)

    out = classifier_head_forward(params, x)
    out = jax.block_until_ready(out)

    # Plain-JAX reference of the PyTorch forward (eval mode => dropout identity).
    pooled = jnp.mean(x, axis=-1)[:, :, 0]                               # (B, num_S)
    ref = jnp.maximum(pooled @ params["w1"] + params["b1"], 0.0)
    ref = ref @ params["w2"] + params["b2"]

    assert out.shape == (B, num_classes), out.shape
    assert bool(jnp.all(jnp.isfinite(out)))
    assert bool(jnp.allclose(out, ref, atol=1e-5, rtol=1e-5))
    print("KERNEL_OK")
</pallas_src>

<mosaic_0001>
module attributes {stable_mosaic.version = 11 : i64} {
  func.func @_head_kernel(%arg0: memref<2x16x5xf32, #tpu.memory_space<vmem>>, %arg1: memref<16x32xf32, #tpu.memory_space<vmem>>, %arg2: memref<1x32xf32, #tpu.memory_space<vmem>>, %arg3: memref<32x4xf32, #tpu.memory_space<vmem>>, %arg4: memref<1x4xf32, #tpu.memory_space<vmem>>, %arg5: memref<2x4xf32, #tpu.memory_space<vmem>>) attributes {dimension_semantics = [], scalar_prefetch = 0 : i64, scratch_operands = 0 : i64, tpu.core_type = #tpu.core_type<tc>} {
    %c0 = arith.constant 0 : index
    %c0_0 = arith.constant 0 : index
    %c0_1 = arith.constant 0 : index
    %0 = vector.load %arg0[%c0, %c0_0, %c0_1] : memref<2x16x5xf32, #tpu.memory_space<vmem>>, vector<2x16x5xf32>
    %cst = arith.constant dense<0.000000e+00> : vector<2x16xf32>
    %1 = vector.multi_reduction <add>, %0, %cst [2] : vector<2x16x5xf32> to vector<2x16xf32>
    %cst_2 = arith.constant 5.000000e+00 : f32
    %2 = vector.broadcast %cst_2 : f32 to vector<2x16xf32>
    %3 = arith.divf %1, %2 : vector<2x16xf32>
    %c0_3 = arith.constant 0 : index
    %c0_4 = arith.constant 0 : index
    %4 = vector.load %arg1[%c0_3, %c0_4] : memref<16x32xf32, #tpu.memory_space<vmem>>, vector<16x32xf32>
    %cst_5 = arith.constant dense<0.000000e+00> : vector<2x32xf32>
    %5 = tpu.matmul %3, %4, %cst_5 {dimension_numbers = #tpu.dot_dimension_numbers<[1], [0], [0], [1], [0, 0, 1, 1], [], []>} : vector<2x16xf32>, vector<16x32xf32>, vector<2x32xf32> -> vector<2x32xf32>
    %c0_6 = arith.constant 0 : index
    %c0_7 = arith.constant 0 : index
    %6 = vector.load %arg2[%c0_6, %c0_7] : memref<1x32xf32, #tpu.memory_space<vmem>>, vector<1x32xf32>
    %7 = vector.broadcast %6 : vector<1x32xf32> to vector<2x32xf32>
    %8 = arith.addf %5, %7 : vector<2x32xf32>
    %cst_8 = arith.constant 0.000000e+00 : f32
    %9 = vector.broadcast %cst_8 : f32 to vector<2x32xf32>
    %10 = arith.maximumf %8, %9 : vector<2x32xf32>
    %c0_9 = arith.constant 0 : index
    %c0_10 = arith.constant 0 : index
    %11 = vector.load %arg3[%c0_9, %c0_10] : memref<32x4xf32, #tpu.memory_space<vmem>>, vector<32x4xf32>
    %cst_11 = arith.constant dense<0.000000e+00> : vector<2x4xf32>
    %12 = tpu.matmul %10, %11, %cst_11 {dimension_numbers = #tpu.dot_dimension_numbers<[1], [0], [0], [1], [0, 0, 1, 1], [], []>} : vector<2x32xf32>, vector<32x4xf32>, vector<2x4xf32> -> vector<2x4xf32>
    %c0_12 = arith.constant 0 : index
    %c0_13 = arith.constant 0 : index
    %13 = vector.load %arg4[%c0_12, %c0_13] : memref<1x4xf32, #tpu.memory_space<vmem>>, vector<1x4xf32>
    %14 = vector.broadcast %13 : vector<1x4xf32> to vector<2x4xf32>
    %15 = arith.addf %12, %14 : vector<2x4xf32>
    %c0_14 = arith.constant 0 : index
    %c0_15 = arith.constant 0 : index
    %16 = vector.load %arg5[%c0_14, %c0_15] : memref<2x4xf32, #tpu.memory_space<vmem>>, vector<2x4xf32>
    tpu.vector_store %arg5[%c0_14, %c0_15], %15 {strides = array<i32>} : memref<2x4xf32, #tpu.memory_space<vmem>>, vector<2x4xf32>,
    return
  }
}

</mosaic_0001>

<bundles_post_ra>
// kernel: tpu_custom_call.1
= control target key start
LH: loop header
LB: loop body
LE: loop exit
PB: predicated region body
PF: predicated region fallthrough
CT: control target
= control target key end

     0   :  { %vm25_vm0 = vcmask 39936   ;;  %s382_s0 = inlined_call_operand.vmem [shape: f32[2,16,5], index: 0, kind: input, shape index: {}]   ;;  %s383_s1 = inlined_call_operand.vmem [shape: f32[16,32], index: 1, kind: input, shape index: {}]   ;;  %s384_s2 = inlined_call_operand.vmem [shape: f32[1,32], index: 2, kind: input, shape index: {}]   ;;  %s385_s3 = inlined_call_operand.vmem [shape: f32[32,4], index: 3, kind: input, shape index: {}]   ;;  %s386_s4 = inlined_call_operand.vmem [shape: f32[1,4], index: 4, kind: input, shape index: {}]   ;;  %s387_s5 = inlined_call_operand.hbm [shape: f32[2,4], index: 5, kind: output, shape index: {}]  }
   0x1   :  { %v23_v0 = vld [vmem:[%s382_s0 + $0x10] sm:$0xff]  ;;  %v21_v1 = vld [vmem:[%s382_s0] sm:$0xff]  ;;  %v24_v2 = vld [vmem:[%s382_s0 + $0x18] sm:$0xff] }
   0x2   :  { %v32_v3 = vsel %vm25_vm0, %v23_v0, 0.0  ;;  %v26_v4 = vsel %vm25_vm0, %v21_v1, 0.0  ;;  %v22_v5 = vld [vmem:[%s382_s0 + $0x8] sm:$0xff] }
   0x3   :  { %10 = vsyncpa [#allocation3], 0  ;;  %33 = vadd.xlane.f32.xlu1 %v32_v3  ;;  %27 = vadd.xlane.f32.xlu0 %v26_v4  ;;  %v35_v6 = vsel %vm25_vm0, %v24_v2, 0.0  ;;  %v29_v7 = vsel %vm25_vm0, %v22_v5, 0.0  ;;  %v310_v8 = vmov 0.0   ;;  %v44_v9 = vld [vmem:[%s383_s1 + $0x8] sm:$0xff]  ;;  %v56_v12 = vlaneseq }
   0x4   :  { %267 = vmatprep.subr.mxu0 %v310_v8  ;;  %v43_v10 = vld [vmem:[%s383_s1] sm:$0xff]  ;;  %274 = vmatprep.subr.mxu1 %v310_v8  ;;  %vm311_vm1 = vmmov 0   ;;  %v157_v11 = vld [vmem:[%s385_s3 + $0x18] sm:$0xff]  ;;  %vm67_vm2 = vcmask 130112   ;;  %vm78_vm3 = vcmask 1041409   ;;  %vm80_vm4 = vcmask 130048  }
   0x5   :  { %268 = vmatpush3.msra.mxu0 %v44_v9  ;;  %271 = vmatprep.mubr.msk.f32.mxu0 %vm311_vm1, %v310_v8  ;;  %v57_v13 = vand.u32 127, %v56_v12  ;;  %v59_v14 = vshrl.u32 %v56_v12, 7  ;;  %v156_v33 = vld [vmem:[%s385_s3 + $0x10] sm:$0xff]  ;;  %v155_v34 = vld [vmem:[%s385_s3 + $0x8] sm:$0xff]  ;;  %v154_v35 = vld [vmem:[%s385_s3] sm:$0xff]  ;;  %vm165_vm5 = vcmask 261120  }
   0x6   :  { %269 = vmatprep.subr.mxu0 %v310_v8  ;;  %282 = vmatprep.mubr.msk.f32.mxu1 %vm311_vm1, %v310_v8  ;;  %v255_v36 = vld [vmem:[%s384_s2] ss:$0 sm:$0xff]  ;;  %s312_s15 = smov [#allocation2]   ;;  %vm239_vm6 = vcmask 25600  }
   0x7   :  { %36 = vadd.xlane.f32.xlu1 %v35_v6  ;;  %30 = vadd.xlane.f32.xlu0 %v29_v7  ;;  %v62_v15 = vadd.s32 4294967288, %v57_v13  ;;  %v60_v18 = vsub.s32 %v57_v13, %v59_v14  ;;  %v257_v41 = vld [vmem:[%s386_s4] ss:$0 sm:$0xff]  ;;  %s247_s16 = sshll.u32 %s312_s15, 4  ;;  %s248_s16 = int_to_ptr.vmem [resolvable:$true] %s247_s16 }
   0x8   :  { %270 = vmatpush3.msra.mxu0 %v43_v10  ;;  %275 = vmatpush3.msra.mxu1 %v157_v11  ;;  %s288_s3 = scalar_lea.vmem %s248_s16, 32  ;;  %p293_p1 = scmp.lt.s32.totalorder %s248_s16, %s248_s16 }
   0x9   :  { %276 = vmatprep.subr.mxu1 %v310_v8  ;;  %v65_v21 = vsub.s32 %v62_v15, %v59_v14  ;;  %p289_p0 = scmp.ne.s32.totalorder %s248_s16, %s288_s3  ;;  %p294_p2 = scmp.lt.s32.totalorder %s288_s3, %s288_s3 }
   0xa   :  { %277 = vmatpush3.msra.mxu1 %v156_v33 }
   0xb   :  { %278 = vmatprep.subr.mxu1 %v310_v8  ;;  %p295_p3 = por %p294_p2, %p293_p1 }
   0xc   :  { %279 = vmatpush3.msra.mxu1 %v155_v34 }
   0xd   :  { %280 = vmatprep.subr.mxu1 %v310_v8  ;;  %p296_p4 = pnand %p295_p3, %p289_p0 }
   0xe   :  { %281 = vmatpush3.msra.mxu1 %v154_v35 }
  0x8c   :  { %v34_v16 = vpop.xlane.xlu1 %33  ;;  %v28_v17 = vpop.xlane.xlu0 %27 }
  0x8d   :  { %v41_v19 = vmul.f32 0.2, %v34_v16  ;;  %v39_v20 = vmul.f32 0.2, %v28_v17 }
  0x8f   :  { %v72_v26 = vrot.slane %v41_v19, %v60_v18  ;;  %v61_v27 = vrot.slane %v39_v20, %v60_v18 }
  0x90   :  { %v37_v22 = vpop.xlane.xlu1 %36  ;;  %v31_v23 = vpop.xlane.xlu0 %30 }
  0x91   :  { %v42_v24 = vmul.f32 0.2, %v37_v22  ;;  %v40_v25 = vmul.f32 0.2, %v31_v23 }
  0x93   :  { %v76_v28 = vrot.slane %v42_v24, %v65_v21  ;;  %v66_v29 = vrot.slane %v40_v25, %v65_v21 }
  0x95   :  { %v68_v30 = vsel %vm67_vm2, %v66_v29, %v61_v27  ;;  %v77_v31 = vsel %vm67_vm2, %v76_v28, %v72_v26 }
  0x96   :  { %v79_v32 = vsel %vm78_vm3, %v77_v31, %v68_v30 }
  0x97   :  { %272 = vmatmul.mubr.msk.f32.vlgmr.msra.gmra.mxu0 %vm80_vm4, %v79_v32 }
 0x157   :  { %v149_v37 = vpop.f32.mrf.mxu0 }
 0x158   :  { %v150_v38 = vadd.f32 %v255_v36, %v149_v37 }
 0x159   :  { %v273_v39 = vpop.f32.mrf.mxu0 }
 0x15a   :  { %v153_v40 = vmax.f32 %v150_v38, 0.0 }
 0x15c   :  { %283 = vmatmul.mubr.msk.f32.vlgmr.msra.gmra.mxu1 %vm165_vm5, %v153_v40 }
 0x21c   :  { %v235_v42 = vpop.f32.mrf.mxu1 }
 0x21d   :  { %v236_v43 = vadd.f32 %v257_v41, %v235_v42 }
 0x21e   :  { %v284_v44 = vpop.f32.mrf.mxu1 }
 0x21f   :  { %240 = vst.msk [vmem:[#allocation2] sm:$0x3] %vm239_vm6, %v236_v43 }
 0x220   :  { %299 = shalt.err (!%p296_p4)
}
 0x221   :  { %250 = dma.vmem_to_hbm [thread:$0]  %s248_s16, 32, %s387_s5, [#allocation3]  }
 0x222   :  { %308 = dma.done.wait [#allocation3], 32  }
 0x223   :  { %309 = vsyncadd [#allocation3], 4294967264 }
 0x224   :  { %254 = vsyncpa [#allocation3], 1 }

</bundles_post_ra>
